<compile_context>
chip_gen: v7x
topology: tpu7x:2x2x1
jax: 0.10.0
libtpu: 0.0.40
codegen_flags: <defaults>
</compile_context>

<pallas_src>
import math

import jax
import jax.numpy as jnp
from jax.experimental import pallas as pl
from jax.experimental.pallas import tpu as pltpu

_LANE = 128
_SUBLANE = 8


def _round_up(x, m):
    return (x + m - 1) // m * m


def _head_kernel(x_ref, w1_ref, b1_ref, w2_ref, b2_ref, o_ref):
    # First linear (MXU, f32 accumulate): [TB, Kp] @ [Kp, Mp] + [1, Mp]
    h = jnp.dot(x_ref[...], w1_ref[...], preferred_element_type=jnp.float32)
    h = h + b1_ref[...]

    # Exact (erf-based) GELU, matching torch.nn.GELU default. Kept in f32.
    h = 0.5 * h * (1.0 + jax.lax.erf(h * jnp.float32(1.0 / math.sqrt(2.0))))

    # Second linear: [TB, Mp] @ [Mp, Np] + [1, Np]  (bf16 matmul inputs, f32 acc)
    out = jnp.dot(h.astype(w2_ref.dtype), w2_ref[...],
                  preferred_element_type=jnp.float32)
    out = out + b2_ref[...]

    # Sigmoid (exp -> EUP slot), in f32.
    out = jax.nn.sigmoid(out)

    o_ref[...] = out.astype(o_ref.dtype)


def binary_classifier_head(x, params, *, use_bf16=True, block_b=None):
    """x: [B, base_dim] f32; params: dict of w1/b1/w2/b2. Returns [B, num_classes] f32."""
    w1, b1, w2, b2 = params["w1"], params["b1"], params["w2"], params["b2"]
    B, base_dim = x.shape
    mid_dim = w1.shape[1]
    num_classes = w2.shape[1]

    # Pad feature dims to the 128-lane width (zero padding is exact: padded K
    # columns / M columns contribute nothing; padded output columns are sliced off).
    Kp = _round_up(base_dim, _LANE)
    Mp = _round_up(mid_dim, _LANE)
    Np = _round_up(num_classes, _LANE)

    in_dtype = jnp.bfloat16 if use_bf16 else jnp.float32

    xp = jnp.zeros((B, Kp), in_dtype).at[:, :base_dim].set(x.astype(in_dtype))
    w1p = jnp.zeros((Kp, Mp), in_dtype).at[:base_dim, :mid_dim].set(w1.astype(in_dtype))
    b1p = jnp.zeros((1, Mp), jnp.float32).at[:, :mid_dim].set(
        b1.astype(jnp.float32).reshape(1, -1))
    w2p = jnp.zeros((Mp, Np), in_dtype).at[:mid_dim, :num_classes].set(w2.astype(in_dtype))
    b2p = jnp.zeros((1, Np), jnp.float32).at[:, :num_classes].set(
        b2.astype(jnp.float32).reshape(1, -1))

    # Batch tile: ~4 MiB of x per tile (8 MiB double-buffered) amortizes per-step
    # overhead and stays well inside the default scoped VMEM on v5e/v6e/v7x.
    if block_b is None:
        bytes_per_row = Kp * jnp.dtype(in_dtype).itemsize
        tb = max(_SUBLANE, min((4 << 20) // bytes_per_row, 2048))
        tb = (tb // _SUBLANE) * _SUBLANE
        block_b = B if B <= tb else tb

    grid = (pl.cdiv(B, block_b),)

    itemsize = jnp.dtype(in_dtype).itemsize
    cost = pl.CostEstimate(
        flops=2 * B * (Kp * Mp + Mp * Np),
        transcendentals=B * (Mp + Np),
        bytes_accessed=(B * Kp * itemsize + Kp * Mp * itemsize + Mp * Np * itemsize
                        + (Mp + Np) * 4 + B * Np * 4),
    )

    out_padded = pl.pallas_call(
        _head_kernel,
        out_shape=jax.ShapeDtypeStruct((B, Np), jnp.float32),
        grid=grid,
        in_specs=[
            pl.BlockSpec((block_b, Kp), lambda i: (i, 0)),  # x: streamed per batch tile
            pl.BlockSpec((Kp, Mp), lambda i: (0, 0)),       # W1: resident
            pl.BlockSpec((1, Mp), lambda i: (0, 0)),        # b1: resident
            pl.BlockSpec((Mp, Np), lambda i: (0, 0)),       # W2: resident
            pl.BlockSpec((1, Np), lambda i: (0, 0)),        # b2: resident
        ],
        out_specs=pl.BlockSpec((block_b, Np), lambda i: (i, 0)),
        compiler_params=pltpu.CompilerParams(
            dimension_semantics=("parallel",),
            vmem_limit_bytes=48 << 20,
        ),
        cost_estimate=cost,
    )(xp, w1p, b1p, w2p, b2p)

    return out_padded[:, :num_classes]


def init_params(key, base_dim, mid_dim, num_classes=1):
    """Deterministic init mimicking torch.nn.Linear defaults (uniform +/- 1/sqrt(fan_in))."""
    k1, k2, k3, k4 = jax.random.split(key, 4)
    lim1 = 1.0 / math.sqrt(base_dim)
    lim2 = 1.0 / math.sqrt(mid_dim)
    return {
        # stored as [in, out] so the kernel uses x @ W directly
        "w1": jax.random.uniform(k1, (base_dim, mid_dim), jnp.float32, -lim1, lim1),
        "b1": jax.random.uniform(k2, (mid_dim,), jnp.float32, -lim1, lim1),
        "w2": jax.random.uniform(k3, (mid_dim, num_classes), jnp.float32, -lim2, lim2),
        "b2": jax.random.uniform(k4, (num_classes,), jnp.float32, -lim2, lim2),
    }


def _reference(x, params, cast_dtype=jnp.float32):
    """Pure-JAX reference matching the torch forward (optionally with bf16 matmul inputs)."""
    xc = x.astype(cast_dtype)
    w1 = params["w1"].astype(cast_dtype)
    w2 = params["w2"].astype(cast_dtype)
    h = jnp.dot(xc, w1, preferred_element_type=jnp.float32) + params["b1"]
    h = 0.5 * h * (1.0 + jax.lax.erf(h * jnp.float32(1.0 / math.sqrt(2.0))))
    out = jnp.dot(h.astype(cast_dtype), w2, preferred_element_type=jnp.float32) + params["b2"]
    return jax.nn.sigmoid(out)


if __name__ == "__main__":
    base_dim, mid_dim, num_classes = 32, 64, 1
    B = 2

    key = jax.random.PRNGKey(0)
    kx, kp = jax.random.split(key)

    x = jax.random.normal(kx, (B, base_dim), jnp.float32)
    params = init_params(kp, base_dim, mid_dim, num_classes)

    out = binary_classifier_head(x, params)
    out = jax.block_until_ready(out)
    assert out.shape == (B, num_classes)

    # Tight check against the same-arithmetic (bf16 matmul inputs) reference.
    ref_bf16 = _reference(x, params, cast_dtype=jnp.bfloat16)
    assert jnp.allclose(out, ref_bf16, atol=2e-3, rtol=2e-3), (out, ref_bf16)

    # Semantic check against the full-f32 torch-equivalent math (loose: bf16 inputs).
    ref_f32 = _reference(x, params, cast_dtype=jnp.float32)
    assert jnp.allclose(out, ref_f32, atol=3e-2, rtol=3e-2), (out, ref_f32)

    print("KERNEL_OK")
</pallas_src>

<mosaic_0001>
module attributes {stable_mosaic.version = 11 : i64} {
  func.func @_head_kernel(%arg0: i32, %arg1: memref<2x128xbf16, #tpu.memory_space<vmem>>, %arg2: memref<128x128xbf16, #tpu.memory_space<vmem>>, %arg3: memref<1x128xf32, #tpu.memory_space<vmem>>, %arg4: memref<128x128xbf16, #tpu.memory_space<vmem>>, %arg5: memref<1x128xf32, #tpu.memory_space<vmem>>, %arg6: memref<2x128xf32, #tpu.memory_space<vmem>>) attributes {dimension_semantics = [#tpu.dimension_semantics<parallel>], iteration_bounds = array<i64: 1>, scalar_prefetch = 0 : i64, scratch_operands = 0 : i64, tpu.core_type = #tpu.core_type<tc>, window_params = [{transform_indices = @transform_0, window_bounds = array<i64: 2, 128>}, {pipeline_mode = #tpu.pipeline_mode<synchronous>, transform_indices = @transform_1, window_bounds = array<i64: 128, 128>}, {pipeline_mode = #tpu.pipeline_mode<synchronous>, transform_indices = @transform_2, window_bounds = array<i64: 1, 128>}, {pipeline_mode = #tpu.pipeline_mode<synchronous>, transform_indices = @transform_3, window_bounds = array<i64: 128, 128>}, {pipeline_mode = #tpu.pipeline_mode<synchronous>, transform_indices = @transform_4, window_bounds = array<i64: 1, 128>}, {transform_indices = @transform_5, window_bounds = array<i64: 2, 128>}]} {
    %c0 = arith.constant 0 : index
    %c0_0 = arith.constant 0 : index
    %0 = vector.load %arg1[%c0, %c0_0] : memref<2x128xbf16, #tpu.memory_space<vmem>>, vector<2x128xbf16>
    %c0_1 = arith.constant 0 : index
    %c0_2 = arith.constant 0 : index
    %1 = vector.load %arg2[%c0_1, %c0_2] : memref<128x128xbf16, #tpu.memory_space<vmem>>, vector<128x128xbf16>
    %cst = arith.constant dense<0.000000e+00> : vector<2x128xf32>
    %2 = tpu.matmul %0, %1, %cst {dimension_numbers = #tpu.dot_dimension_numbers<[1], [0], [0], [1], [0, 0, 1, 1], [], []>} : vector<2x128xbf16>, vector<128x128xbf16>, vector<2x128xf32> -> vector<2x128xf32>
    %c0_3 = arith.constant 0 : index
    %c0_4 = arith.constant 0 : index
    %3 = vector.load %arg3[%c0_3, %c0_4] : memref<1x128xf32, #tpu.memory_space<vmem>>, vector<1x128xf32>
    %4 = vector.broadcast %3 : vector<1x128xf32> to vector<2x128xf32>
    %5 = arith.addf %2, %4 : vector<2x128xf32>
    %cst_5 = arith.constant 5.000000e-01 : f32
    %6 = vector.broadcast %cst_5 : f32 to vector<2x128xf32>
    %7 = arith.mulf %6, %5 : vector<2x128xf32>
    %cst_6 = arith.constant 0.707106769 : f32
    %8 = vector.broadcast %cst_6 : f32 to vector<2x128xf32>
    %9 = arith.mulf %5, %8 : vector<2x128xf32>
    %10 = math.erf %9 : vector<2x128xf32>
    %cst_7 = arith.constant 1.000000e+00 : f32
    %11 = vector.broadcast %cst_7 : f32 to vector<2x128xf32>
    %12 = arith.addf %11, %10 : vector<2x128xf32>
    %13 = arith.mulf %7, %12 : vector<2x128xf32>
    %14 = arith.truncf %13 : vector<2x128xf32> to vector<2x128xbf16>
    %c0_8 = arith.constant 0 : index
    %c0_9 = arith.constant 0 : index
    %15 = vector.load %arg4[%c0_8, %c0_9] : memref<128x128xbf16, #tpu.memory_space<vmem>>, vector<128x128xbf16>
    %cst_10 = arith.constant dense<0.000000e+00> : vector<2x128xf32>
    %16 = tpu.matmul %14, %15, %cst_10 {dimension_numbers = #tpu.dot_dimension_numbers<[1], [0], [0], [1], [0, 0, 1, 1], [], []>} : vector<2x128xbf16>, vector<128x128xbf16>, vector<2x128xf32> -> vector<2x128xf32>
    %c0_11 = arith.constant 0 : index
    %c0_12 = arith.constant 0 : index
    %17 = vector.load %arg5[%c0_11, %c0_12] : memref<1x128xf32, #tpu.memory_space<vmem>>, vector<1x128xf32>
    %18 = vector.broadcast %17 : vector<1x128xf32> to vector<2x128xf32>
    %19 = arith.addf %16, %18 : vector<2x128xf32>
    %20 = arith.negf %19 : vector<2x128xf32>
    %21 = math.exp %20 : vector<2x128xf32>
    %cst_13 = arith.constant 1.000000e+00 : f32
    %22 = vector.broadcast %cst_13 : f32 to vector<2x128xf32>
    %23 = arith.addf %22, %21 : vector<2x128xf32>
    %24 = arith.divf %22, %23 : vector<2x128xf32>
    %c0_14 = arith.constant 0 : index
    %c0_15 = arith.constant 0 : index
    %25 = vector.load %arg6[%c0_14, %c0_15] : memref<2x128xf32, #tpu.memory_space<vmem>>, vector<2x128xf32>
    tpu.vector_store %arg6[%c0_14, %c0_15], %24 {strides = array<i32>} : memref<2x128xf32, #tpu.memory_space<vmem>>, vector<2x128xf32>,
    return
  }
  func.func @transform_0(%arg0: i32) -> (i32, i32) {
    %c0_i32 = arith.constant 0 : i32
    %c0_i32_0 = arith.constant 0 : i32
    return %arg0, %c0_i32 : i32, i32
  }
  func.func @transform_1(%arg0: i32) -> (i32, i32) {
    %c0_i32 = arith.constant 0 : i32
    %c0_i32_0 = arith.constant 0 : i32
    %c0_i32_1 = arith.constant 0 : i32
    return %c0_i32, %c0_i32_0 : i32, i32
  }
  func.func @transform_2(%arg0: i32) -> (i32, i32) {
    %c0_i32 = arith.constant 0 : i32
    %c0_i32_0 = arith.constant 0 : i32
    %c0_i32_1 = arith.constant 0 : i32
    return %c0_i32, %c0_i32_0 : i32, i32
  }
  func.func @transform_3(%arg0: i32) -> (i32, i32) {
    %c0_i32 = arith.constant 0 : i32
    %c0_i32_0 = arith.constant 0 : i32
    %c0_i32_1 = arith.constant 0 : i32
    return %c0_i32, %c0_i32_0 : i32, i32
  }
  func.func @transform_4(%arg0: i32) -> (i32, i32) {
    %c0_i32 = arith.constant 0 : i32
    %c0_i32_0 = arith.constant 0 : i32
    %c0_i32_1 = arith.constant 0 : i32
    return %c0_i32, %c0_i32_0 : i32, i32
  }
  func.func @transform_5(%arg0: i32) -> (i32, i32) {
    %c0_i32 = arith.constant 0 : i32
    %c0_i32_0 = arith.constant 0 : i32
    return %arg0, %c0_i32 : i32, i32
  }
}

</mosaic_0001>

<bundles_post_ra>
// kernel: tpu_custom_call.1
= control target key start
LH: loop header
LB: loop body
LE: loop exit
PB: predicated region body
PF: predicated region fallthrough
CT: control target
= control target key end

     0   :  { %10 = vsyncpa [#allocation3], 0  ;;  %s612_s0 = inlined_call_operand.hbm [shape: bf16[2,128], index: 0, kind: input, shape index: {}]   ;;  %s613_s1 = inlined_call_operand.hbm [shape: bf16[128,128], index: 1, kind: input, shape index: {}]   ;;  %s614_s2 = inlined_call_operand.vmem [shape: f32[1,128], index: 2, kind: input, shape index: {}]   ;;  %s615_s3 = inlined_call_operand.hbm [shape: bf16[128,128], index: 3, kind: input, shape index: {}]   ;;  %s616_s4 = inlined_call_operand.vmem [shape: f32[1,128], index: 4, kind: input, shape index: {}]   ;;  %s617_s5 = inlined_call_operand.hbm [shape: f32[2,128], index: 5, kind: output, shape index: {}]  }
   0x1   :  { %11 = vsyncpa [#allocation6], 0 }
   0x2   :  { %12 = vsyncpa [#allocation4], 0  ;;  %s514_s18 = smov [#allocation5]   ;;  %s420_s22 = scalar_lea.hbm %s613_s1, 1024 }
   0x3   :  { %s28_s19 = sshll.u32 %s514_s18, 4  ;;  %p421_p0 = scmp.ne.s32.totalorder %s613_s1, %s420_s22  ;;  %s29_s19 = int_to_ptr.vmem [resolvable:$true] %s28_s19 }
   0x4   :  { %p424_p1 = scmp.lt.u32.totalorder %s420_s22, %s613_s1 }
   0x6   :  { %p426_p2 = pnand %p424_p1, %p421_p0 }
   0x8   :  { %429 = shalt.err (!%p426_p2)
}
   0x9   :  { %s430_s27 = scalar_lea.vmem %s29_s19, 1024  ;;  %p435_p4 = scmp.lt.s32.totalorder %s29_s19, %s29_s19 }
   0xa   :  { %p431_p3 = scmp.ne.s32.totalorder %s29_s19, %s430_s27  ;;  %p436_p5 = scmp.lt.s32.totalorder %s430_s27, %s430_s27 }
   0xc   :  { %p437_p6 = por %p436_p5, %p435_p4 }
   0xe   :  { %p438_p7 = pnand %p437_p6, %p431_p3 }
  0x10   :  { %441 = shalt.err (!%p438_p7)
}
  0x11   :  { %s515_s28 = smov 64   ;;  %s516_s29 = smov 4  }
  0x12   :  { %34 = dma.hbm_to_vmem [thread:$0]  %s613_s1, 1024, %s29_s19, [#allocation6], %s515_s28, %s515_s28, %s516_s29  }
  0x13   :  { %s517_s7 = smov [#allocation2]   ;;  %s518_s9 = smov [#allocation7]  }
  0x14   :  { %s19_s8 = sshll.u32 %s517_s7, 4  ;;  %s42_s10 = sshll.u32 %s518_s9, 4  ;;  %s20_s8 = int_to_ptr.vmem [resolvable:$true] %s19_s8  ;;  %s43_s10 = int_to_ptr.vmem [resolvable:$true] %s42_s10 }
  0x15   :  { %s442_s13 = scalar_lea.hbm %s612_s0, 16 }
  0x16   :  { %p443_p8 = scmp.ne.s32.totalorder %s612_s0, %s442_s13  ;;  %p446_p9 = scmp.lt.u32.totalorder %s442_s13, %s612_s0 }
  0x18   :  { %p448_p10 = pnand %p446_p9, %p443_p8 }
  0x1a   :  { %451 = shalt.err (!%p448_p10)
}
  0x1b   :  { %s452_s1 = scalar_lea.vmem %s20_s8, 16  ;;  %s456_s18 = scalar_lea.vmem %s20_s8, 32 }
  0x1c   :  { %p453_p11 = scmp.ne.s32.totalorder %s20_s8, %s452_s1  ;;  %p457_p12 = scmp.lt.s32.totalorder %s20_s8, %s20_s8 }
  0x1d   :  { %p458_p13 = scmp.lt.s32.totalorder %s456_s18, %s452_s1 }
  0x1f   :  { %p459_p0 = por %p458_p13, %p457_p12 }
  0x21   :  { %p460_p1 = pnand %p459_p0, %p453_p11 }
  0x23   :  { %463 = shalt.err (!%p460_p1)
}
  0x24   :  { %22 = dma.hbm_to_vmem [thread:$0]  %s612_s0, 16, %s20_s8, [#allocation3]  }
  0x25   :  { %s464_s23 = scalar_lea.hbm %s615_s3, 1024 }
  0x26   :  { %p465_p2 = scmp.ne.s32.totalorder %s615_s3, %s464_s23  ;;  %p468_p3 = scmp.lt.u32.totalorder %s464_s23, %s615_s3 }
  0x28   :  { %p470_p4 = pnand %p468_p3, %p465_p2 }
  0x2a   :  { %473 = shalt.err (!%p470_p4)
}
  0x2b   :  { %s474_s30 = scalar_lea.vmem %s43_s10, 1024  ;;  %p479_p6 = scmp.lt.s32.totalorder %s43_s10, %s43_s10 }
  0x2c   :  { %p475_p5 = scmp.ne.s32.totalorder %s43_s10, %s474_s30  ;;  %p480_p7 = scmp.lt.s32.totalorder %s474_s30, %s474_s30 }
  0x2e   :  { %p481_p8 = por %p480_p7, %p479_p6 }
  0x30   :  { %p482_p9 = pnand %p481_p8, %p475_p5 }
  0x32   :  { %485 = shalt.err (!%p482_p9)
}
  0x33   :  { %48 = dma.hbm_to_vmem [thread:$0]  %s615_s3, 1024, %s43_s10, [#allocation6], %s515_s28, %s515_s28, %s516_s29  }
  0x34   :  { %508 = dma.done.wait [#allocation3], 16  }
  0x35   :  { %509 = vsyncadd [#allocation3], 4294967280 }
  0x36   :  { %510 = dma.done.wait [#allocation6], 2048  }
  0x37   :  { %511 = vsyncadd [#allocation6], 4294965248  ;;  %v519_v0 = vmov 0.0   ;;  %vm520_vm0 = vmmov 0   ;;  %v398_v1 = vld [vmem:[#allocation5] sm:$0xff]   ;;  %v399_v2 = vld [vmem:[#allocation5 + $0x8] sm:$0xff]  }
  0x38   :  { %350 = vmatprep.subr.bf16.mxu0 %v519_v0  ;;  %366 = vmatprep.mubr.msk.bf16.mxu0 %vm520_vm0, %v519_v0  ;;  %v400_v3 = vld [vmem:[#allocation5 + $0x10] sm:$0xff]   ;;  %v406_v4 = vld [vmem:[#allocation7] sm:$0xff]   ;;  %v401_v5 = vld [vmem:[#allocation5 + $0x18] sm:$0xff]  }
  0x39   :  { %370 = vmatprep.subr.bf16.mxu1 %v519_v0  ;;  %386 = vmatprep.mubr.msk.bf16.mxu1 %vm520_vm0, %v519_v0  ;;  %v407_v6 = vld [vmem:[#allocation7 + $0x8] sm:$0xff]   ;;  %v402_v7 = vld [vmem:[#allocation5 + $0x20] sm:$0xff]   ;;  %v408_v8 = vld [vmem:[#allocation7 + $0x10] sm:$0xff]  }
  0x3a   :  { %351 = vmatpush3.bf16.msra.mxu0 %v398_v1  ;;  %371 = vmatpush3.bf16.msra.mxu1 %v406_v4  ;;  %v403_v9 = vld [vmem:[#allocation5 + $0x28] sm:$0xff]   ;;  %v404_v10 = vld [vmem:[#allocation5 + $0x30] sm:$0xff]   ;;  %v405_v11 = vld [vmem:[#allocation5 + $0x38] sm:$0xff]  }
  0x3b   :  { %352 = vmatprep.subr.bf16.mxu0 %v519_v0  ;;  %372 = vmatprep.subr.bf16.mxu1 %v519_v0  ;;  %v61_v12 = vld [vmem:[#allocation2] sm:$0x1]  ;;  %v410_v14 = vld [vmem:[#allocation7 + $0x20] sm:$0xff]   ;;  %v411_v15 = vld [vmem:[#allocation7 + $0x28] sm:$0xff]  }
  0x3c   :  { %v409_v13 = vld [vmem:[#allocation7 + $0x18] sm:$0xff]   ;;  %v412_v16 = vld [vmem:[#allocation7 + $0x30] sm:$0xff]  }
  0x3d   :  { %v413_v17 = vld [vmem:[#allocation7 + $0x38] sm:$0xff]  }
  0x3e   :  { %353 = vmatpush3.bf16.msra.mxu0 %v399_v2  ;;  %373 = vmatpush3.bf16.msra.mxu1 %v407_v6  ;;  %v313_v18 = vld [vmem:[%s614_s2] ss:$0 sm:$0xff]  ;;  %s521_s2 = smov [#allocation8]  }
  0x3f   :  { %354 = vmatprep.subr.bf16.mxu0 %v519_v0  ;;  %374 = vmatprep.subr.bf16.mxu1 %v519_v0  ;;  %v322_v30 = vld [vmem:[%s616_s4] ss:$0 sm:$0xff]  ;;  %s303_s8 = sshll.u32 %s521_s2, 4  ;;  %s304_s8 = int_to_ptr.vmem [resolvable:$true] %s303_s8 }
  0x40   :  { %s486_s9 = scalar_lea.vmem %s304_s8, 32  ;;  %p491_p11 = scmp.lt.s32.totalorder %s304_s8, %s304_s8 }
  0x41   :  { %p487_p10 = scmp.ne.s32.totalorder %s304_s8, %s486_s9  ;;  %p492_p12 = scmp.lt.s32.totalorder %s486_s9, %s486_s9 }
  0x42   :  { %355 = vmatpush3.bf16.msra.mxu0 %v400_v3  ;;  %375 = vmatpush3.bf16.msra.mxu1 %v408_v8 }
  0x43   :  { %356 = vmatprep.subr.bf16.mxu0 %v519_v0  ;;  %376 = vmatprep.subr.bf16.mxu1 %v519_v0  ;;  %p493_p13 = por %p492_p12, %p491_p11 }
  0x45   :  { %p494_p0 = pnand %p493_p13, %p487_p10 }
  0x46   :  { %357 = vmatpush3.bf16.msra.mxu0 %v401_v5  ;;  %377 = vmatpush3.bf16.msra.mxu1 %v409_v13 }
  0x47   :  { %358 = vmatprep.subr.bf16.mxu0 %v519_v0  ;;  %378 = vmatprep.subr.bf16.mxu1 %v519_v0 }
  0x4a   :  { %359 = vmatpush3.bf16.msra.mxu0 %v402_v7  ;;  %379 = vmatpush3.bf16.msra.mxu1 %v410_v14 }
  0x4b   :  { %360 = vmatprep.subr.bf16.mxu0 %v519_v0  ;;  %380 = vmatprep.subr.bf16.mxu1 %v519_v0 }
  0x4e   :  { %361 = vmatpush3.bf16.msra.mxu0 %v403_v9  ;;  %381 = vmatpush3.bf16.msra.mxu1 %v411_v15 }
  0x4f   :  { %362 = vmatprep.subr.bf16.mxu0 %v519_v0  ;;  %382 = vmatprep.subr.bf16.mxu1 %v519_v0 }
  0x52   :  { %363 = vmatpush3.bf16.msra.mxu0 %v404_v10  ;;  %383 = vmatpush3.bf16.msra.mxu1 %v412_v16 }
  0x53   :  { %364 = vmatprep.subr.bf16.mxu0 %v519_v0  ;;  %384 = vmatprep.subr.bf16.mxu1 %v519_v0 }
  0x56   :  { %365 = vmatpush3.bf16.msra.mxu0 %v405_v11  ;;  %385 = vmatpush3.bf16.msra.mxu1 %v413_v17 }
  0x59   :  { %367 = vmatmul.mubr.bf16.vlgmr.msra.gmra.mrb[0].mxu0 %v61_v12 }
 0x12c   :  { %v167_v19 = vpop.f32.mrb[0].mxu0 }
 0x12d   :  { %v168_v20 = vadd.f32 %v313_v18, %v167_v19  ;;  %v368_v21 = vpop.f32.mrb[1].mxu0 }
 0x12e   :  { %v170_v22 = vpop.f32.mrb[2].mxu0 }
 0x12f   :  { %v174_v23 = vmul.f32 0.70710677, %v168_v20  ;;  %v369_v24 = vpop.f32.mrb[3].mxu0  ;;  %v173_v26 = vmul.f32 0.5, %v168_v20 }
 0x131   :  { %414 = verf.f32 %v174_v23 }
 0x13b   :  { %v415_v25 = vpop.eup %414 }
 0x13c   :  { %v176_v27 = vadd.f32 1.0, %v415_v25 }
 0x13e   :  { %v177_v28 = vmul.f32 %v176_v27, %v173_v26 }
 0x140   :  { %v178_v29 = vpack.c.bf16 %v177_v28, %v177_v28 }
 0x142   :  { %387 = vmatmul.mubr.bf16.vlgmr.msra.gmra.mrb[0].mxu1 %v178_v29 }
 0x215   :  { %v284_v31 = vpop.f32.mrb[0].mxu1 }
 0x216   :  { %v285_v32 = vadd.f32 %v322_v30, %v284_v31  ;;  %v388_v33 = vpop.f32.mrb[1].mxu1 }
 0x217   :  { %v287_v34 = vpop.f32.mrb[2].mxu1 }
 0x218   :  { %v331_v35 = vmul.f32 -1.442695, %v285_v32  ;;  %v389_v36 = vpop.f32.mrb[3].mxu1 }
 0x21a   :  { %416 = vpow2.f32 %v331_v35 }
 0x224   :  { %v417_v37 = vpop.eup %416 }
 0x225   :  { %v293_v38 = vadd.f32 1.0, %v417_v37 }
 0x227   :  { %418 = vrcp.f32 %v293_v38 }
 0x231   :  { %v419_v39 = vpop.eup %418 }
 0x232   :  { %296 = vst [vmem:[#allocation8] sm:$0x3] %v419_v39 }
 0x233   :  { %497 = shalt.err (!%p494_p0)
}
 0x234   :  { %s498_s11 = scalar_lea.hbm %s617_s5, 32 }
 0x235   :  { %p499_p1 = scmp.ne.s32.totalorder %s617_s5, %s498_s11  ;;  %p502_p2 = scmp.lt.u32.totalorder %s498_s11, %s617_s5 }
 0x237   :  { %p504_p3 = pnand %p502_p2, %p499_p1 }
 0x239   :  { %507 = shalt.err (!%p504_p3)
}
 0x23a   :  { %306 = dma.vmem_to_hbm [thread:$0]  %s304_s8, 32, %s617_s5, [#allocation4]  }
 0x23b   :  { %512 = dma.done.wait [#allocation4], 32  }
 0x23c   :  { %513 = vsyncadd [#allocation4], 4294967264 }
 0x23d   :  { %310 = vsyncpa [#allocation3], 1 }
 0x23e   :  { %311 = vsyncpa [#allocation6], 1 }
 0x23f   :  { %312 = vsyncpa [#allocation4], 1 }

</bundles_post_ra>
